<compile_context>
chip_gen: v6e
topology: v6e:2x2x1
jax: 0.10.0
libtpu: 0.0.40
codegen_flags: <defaults>
</compile_context>

<pallas_src>
import jax
import jax.numpy as jnp
import numpy as np
from jax.experimental import pallas as pl
from jax.experimental.pallas import tpu as pltpu


def _round_up(v: int, m: int) -> int:
    return (v + m - 1) // m * m


def _rfft_kernel(w_hi_ref, w_lo_ref, x_hi_ref, x_lo_ref, o_ref):
    # w_*_ref: (TK, Np)  bf16 hi/lo halves of the stacked cos/-sin basis tile
    # x_*_ref: (Np, TM)  bf16 hi/lo halves of a column tile of (N, B*C) input
    # o_ref  : (TK, TM)  f32 tile of the stacked re/im result
    w_hi = w_hi_ref[...]
    acc = jnp.dot(w_hi, x_hi_ref[...], preferred_element_type=jnp.float32)
    acc = acc + jnp.dot(w_hi, x_lo_ref[...], preferred_element_type=jnp.float32)
    acc = acc + jnp.dot(w_lo_ref[...], x_hi_ref[...], preferred_element_type=jnp.float32)
    # (the dropped W_lo @ X_lo term is ~2^-18 relative — far below f32 tol)
    o_ref[...] = acc


def fft_signal_processing(x):
    """rfft along axis 1 with 'ortho' normalization -> complex64 (B, N//2+1, C)."""
    B, N, C = x.shape
    K = N // 2 + 1
    M = B * C

    # ---- VMEM budget (generation-aware, with headroom) ---------------------
    try:
        vmem_cap = int(pltpu.get_tpu_info().vmem_capacity_bytes)
    except Exception:
        vmem_cap = 64 * 1024 * 1024          # assume the most restrictive (v7x per-TC)
    budget = int(vmem_cap * 0.85)

    # ---- aligned / padded sizes --------------------------------------------
    Np = _round_up(N, 128)                   # contraction dim: lane aligned

    # Output column tile (lane dim).  >=256 for the 256x256 MXUs when M allows,
    # 512 for large M; shrink if double-buffered X tiles would blow the budget.
    if M <= 128:
        TM = 128
    elif M <= 512:
        TM = 256
    else:
        TM = 512
    while TM > 128 and 2 * (2 * Np * TM * 2) > budget // 3:
        TM //= 2
    Mp = _round_up(M, TM)

    # Stacked (re, im) row tile.  Bound the double-buffered hi/lo basis tiles
    # (8 bytes per basis row: 2 halves * 2 buffers * 2 B/elem) to ~1/3 budget.
    Kp0 = _round_up(2 * K, 8)
    tk_cap = max(8, ((budget // 3) // (Np * 8)) // 8 * 8)
    TK = min(Kp0, tk_cap)
    Kp = _round_up(Kp0, TK)

    # ---- stacked, ortho-scaled real-DFT basis (deterministic, in-script) ---
    n = np.arange(N)[None, :]
    k = np.arange(K)[:, None]
    ang = 2.0 * np.pi * k * n / N
    scale = 1.0 / np.sqrt(N)                 # norm='ortho'
    w_np = np.zeros((Kp, Np), dtype=np.float32)
    w_np[:K, :N] = np.cos(ang) * scale       # rows [0, K)  -> real part
    w_np[K:2 * K, :N] = -np.sin(ang) * scale  # rows [K, 2K) -> imag part
    w = jnp.asarray(w_np)
    w_hi = w.astype(jnp.bfloat16)
    w_lo = (w - w_hi.astype(jnp.float32)).astype(jnp.bfloat16)

    # ---- lane-dense input slab: (B, N, C) -> (N, B*C), zero-padded, hi/lo --
    x_mat = jnp.transpose(x.astype(jnp.float32), (1, 0, 2)).reshape(N, M)
    x_mat = jnp.pad(x_mat, ((0, Np - N), (0, Mp - M)))
    x_hi = x_mat.astype(jnp.bfloat16)
    x_lo = (x_mat - x_hi.astype(jnp.float32)).astype(jnp.bfloat16)

    n_m = Mp // TM
    n_k = Kp // TK

    # Double-buffered tile footprint + headroom, capped at 85% of capacity.
    need = 2 * (2 * TK * Np * 2 + 2 * Np * TM * 2 + TK * TM * 4)
    vmem_limit = min(max(need + 8 * 1024 * 1024, 32 * 1024 * 1024), budget)

    out = pl.pallas_call(
        _rfft_kernel,
        out_shape=jax.ShapeDtypeStruct((Kp, Mp), jnp.float32),
        grid_spec=pltpu.PrefetchScalarGridSpec(
            num_scalar_prefetch=0,
            grid=(n_m, n_k),                                   # M tiles outer, K tiles inner
            in_specs=[
                pl.BlockSpec((TK, Np), lambda i, j: (j, 0)),   # W_hi row tile
                pl.BlockSpec((TK, Np), lambda i, j: (j, 0)),   # W_lo row tile
                pl.BlockSpec((Np, TM), lambda i, j: (0, i)),   # X_hi col tile (resident over j)
                pl.BlockSpec((Np, TM), lambda i, j: (0, i)),   # X_lo col tile (resident over j)
            ],
            out_specs=pl.BlockSpec((TK, TM), lambda i, j: (j, i)),
        ),
        compiler_params=pltpu.CompilerParams(
            dimension_semantics=("parallel", "parallel"),      # shard across TCs on v7x
            vmem_limit_bytes=vmem_limit,
        ),
        cost_estimate=pl.CostEstimate(
            flops=3 * 2 * (2 * K) * N * M,                     # three bf16 passes, unpadded dims
            transcendentals=0,
            bytes_accessed=2 * (2 * (2 * K) * N) + 2 * (2 * N * M) + 4 * (2 * K) * M,
        ),
    )(w_hi, w_lo, x_hi, x_lo)

    # ---- strip padding, split re/im, restore (B, K, C) layout --------------
    out = out[:, :M]
    re = out[:K].reshape(K, B, C).transpose(1, 0, 2)
    im = out[K:2 * K].reshape(K, B, C).transpose(1, 0, 2)
    return jax.lax.complex(re, im)           # complex64, matches torch.fft.rfft(float32)


if __name__ == "__main__":
    key = jax.random.PRNGKey(0)
    B, N, C = 2, 16, 4                       # (batch, in_dim, in_channels)
    x = jax.random.normal(key, (B, N, C), dtype=jnp.float32)

    out = jax.block_until_ready(fft_signal_processing(x))

    ref = jnp.fft.rfft(x, axis=1, norm="ortho")
    assert out.shape == (B, N // 2 + 1, C), out.shape
    assert out.dtype == jnp.complex64, out.dtype
    assert jnp.allclose(out, ref, atol=1e-4, rtol=1e-4), float(jnp.max(jnp.abs(out - ref)))

    print("KERNEL_OK")
</pallas_src>

<mosaic_0001>
module attributes {stable_mosaic.version = 11 : i64} {
  func.func @_rfft_kernel(%arg0: i32, %arg1: i32, %arg2: memref<24x128xbf16, #tpu.memory_space<vmem>>, %arg3: memref<24x128xbf16, #tpu.memory_space<vmem>>, %arg4: memref<128x128xbf16, #tpu.memory_space<vmem>>, %arg5: memref<128x128xbf16, #tpu.memory_space<vmem>>, %arg6: memref<24x128xf32, #tpu.memory_space<vmem>>) attributes {dimension_semantics = [#tpu.dimension_semantics<parallel>, #tpu.dimension_semantics<parallel>], iteration_bounds = array<i64: 1, 1>, scalar_prefetch = 0 : i64, scratch_operands = 0 : i64, tpu.core_type = #tpu.core_type<tc>, window_params = [{transform_indices = @transform_0, window_bounds = array<i64: 24, 128>}, {transform_indices = @transform_1, window_bounds = array<i64: 24, 128>}, {transform_indices = @transform_2, window_bounds = array<i64: 128, 128>}, {transform_indices = @transform_3, window_bounds = array<i64: 128, 128>}, {transform_indices = @transform_4, window_bounds = array<i64: 24, 128>}]} {
    %c0 = arith.constant 0 : index
    %c0_0 = arith.constant 0 : index
    %0 = vector.load %arg2[%c0, %c0_0] : memref<24x128xbf16, #tpu.memory_space<vmem>>, vector<24x128xbf16>
    %c0_1 = arith.constant 0 : index
    %c0_2 = arith.constant 0 : index
    %1 = vector.load %arg4[%c0_1, %c0_2] : memref<128x128xbf16, #tpu.memory_space<vmem>>, vector<128x128xbf16>
    %cst = arith.constant dense<0.000000e+00> : vector<24x128xf32>
    %2 = tpu.matmul %0, %1, %cst {dimension_numbers = #tpu.dot_dimension_numbers<[1], [0], [0], [1], [0, 0, 1, 1], [], []>} : vector<24x128xbf16>, vector<128x128xbf16>, vector<24x128xf32> -> vector<24x128xf32>
    %c0_3 = arith.constant 0 : index
    %c0_4 = arith.constant 0 : index
    %3 = vector.load %arg5[%c0_3, %c0_4] : memref<128x128xbf16, #tpu.memory_space<vmem>>, vector<128x128xbf16>
    %cst_5 = arith.constant dense<0.000000e+00> : vector<24x128xf32>
    %4 = tpu.matmul %0, %3, %cst_5 {dimension_numbers = #tpu.dot_dimension_numbers<[1], [0], [0], [1], [0, 0, 1, 1], [], []>} : vector<24x128xbf16>, vector<128x128xbf16>, vector<24x128xf32> -> vector<24x128xf32>
    %5 = arith.addf %2, %4 : vector<24x128xf32>
    %c0_6 = arith.constant 0 : index
    %c0_7 = arith.constant 0 : index
    %6 = vector.load %arg3[%c0_6, %c0_7] : memref<24x128xbf16, #tpu.memory_space<vmem>>, vector<24x128xbf16>
    %c0_8 = arith.constant 0 : index
    %c0_9 = arith.constant 0 : index
    %7 = vector.load %arg4[%c0_8, %c0_9] : memref<128x128xbf16, #tpu.memory_space<vmem>>, vector<128x128xbf16>
    %cst_10 = arith.constant dense<0.000000e+00> : vector<24x128xf32>
    %8 = tpu.matmul %6, %7, %cst_10 {dimension_numbers = #tpu.dot_dimension_numbers<[1], [0], [0], [1], [0, 0, 1, 1], [], []>} : vector<24x128xbf16>, vector<128x128xbf16>, vector<24x128xf32> -> vector<24x128xf32>
    %9 = arith.addf %5, %8 : vector<24x128xf32>
    %c0_11 = arith.constant 0 : index
    %c0_12 = arith.constant 0 : index
    %10 = vector.load %arg6[%c0_11, %c0_12] : memref<24x128xf32, #tpu.memory_space<vmem>>, vector<24x128xf32>
    tpu.vector_store %arg6[%c0_11, %c0_12], %9 {strides = array<i32>} : memref<24x128xf32, #tpu.memory_space<vmem>>, vector<24x128xf32>,
    return
  }
  func.func @transform_0(%arg0: i32, %arg1: i32) -> (i32, i32) {
    %c0_i32 = arith.constant 0 : i32
    %c0_i32_0 = arith.constant 0 : i32
    return %arg1, %c0_i32 : i32, i32
  }
  func.func @transform_1(%arg0: i32, %arg1: i32) -> (i32, i32) {
    %c0_i32 = arith.constant 0 : i32
    %c0_i32_0 = arith.constant 0 : i32
    return %arg1, %c0_i32 : i32, i32
  }
  func.func @transform_2(%arg0: i32, %arg1: i32) -> (i32, i32) {
    %c0_i32 = arith.constant 0 : i32
    %c0_i32_0 = arith.constant 0 : i32
    return %c0_i32, %arg0 : i32, i32
  }
  func.func @transform_3(%arg0: i32, %arg1: i32) -> (i32, i32) {
    %c0_i32 = arith.constant 0 : i32
    %c0_i32_0 = arith.constant 0 : i32
    return %c0_i32, %arg0 : i32, i32
  }
  func.func @transform_4(%arg0: i32, %arg1: i32) -> (i32, i32) {
    %c0_i32 = arith.constant 0 : i32
    return %arg1, %arg0 : i32, i32
  }
}

</mosaic_0001>

<bundles_post_ra>
// kernel: tpu_custom_call.1
= control target key start
LH: loop header
LB: loop body
LE: loop exit
PB: predicated region body
PF: predicated region fallthrough
CT: control target
= control target key end

     0   :  { %9 = vsyncpa [#allocation3], 0  ;;  %s705_s0 = inlined_call_operand.hbm [shape: bf16[24,128], index: 0, kind: input, shape index: {}]   ;;  %s706_s1 = inlined_call_operand.hbm [shape: bf16[24,128], index: 1, kind: input, shape index: {}]   ;;  %s707_s2 = inlined_call_operand.hbm [shape: bf16[128,128], index: 2, kind: input, shape index: {}]   ;;  %s708_s3 = inlined_call_operand.hbm [shape: bf16[128,128], index: 3, kind: input, shape index: {}]   ;;  %s709_s4 = inlined_call_operand.hbm [shape: f32[24,128], index: 4, kind: output, shape index: {}]  }
   0x1   :  { %10 = vsyncpa [#allocation6], 0 }
   0x2   :  { %11 = vsyncpa [#allocation9], 0 }
   0x3   :  { %12 = vsyncpa [#allocation4], 0  ;;  %s644_s15 = smov [#allocation5]   ;;  %s645_s17 = smov [#allocation2]  }
   0x4   :  { %s30_s16 = sshll.u32 %s644_s15, 4  ;;  %s18_s18 = sshll.u32 %s645_s17, 4  ;;  %s31_s16 = int_to_ptr.vmem [resolvable:$true] %s30_s16  ;;  %s19_s18 = int_to_ptr.vmem [resolvable:$true] %s18_s18 }
   0x5   :  { %s544_s19 = scalar_lea.vmem %s31_s16, 192  ;;  %p549_p1 = scmp.lt.s32.totalorder %s31_s16, %s31_s16 }
   0x6   :  { %p545_p0 = scmp.ne.s32.totalorder %s31_s16, %s544_s19  ;;  %p550_p2 = scmp.lt.s32.totalorder %s544_s19, %s544_s19 }
   0x8   :  { %p551_p3 = por %p550_p2, %p549_p1 }
   0xa   :  { %p552_p4 = pnand %p551_p3, %p545_p0 }
   0xc   :  { %555 = shalt.err (!%p552_p4)
}
   0xd   :  { %s646_s20 = smov 64   ;;  %s647_s21 = smov 4  }
   0xe   :  { %36 = dma.hbm_to_vmem [thread:$0]  %s706_s1, 192, %s31_s16, [#allocation6], %s646_s20, %s646_s20, %s647_s21  }
   0xf   :  { %s564_s24 = scalar_lea.vmem %s19_s18, 192  ;;  %p569_p6 = scmp.lt.s32.totalorder %s19_s18, %s19_s18 }
  0x10   :  { %p565_p5 = scmp.ne.s32.totalorder %s19_s18, %s564_s24  ;;  %p570_p7 = scmp.lt.s32.totalorder %s564_s24, %s564_s24 }
  0x12   :  { %p571_p8 = por %p570_p7, %p569_p6 }
  0x14   :  { %p572_p9 = pnand %p571_p8, %p565_p5 }
  0x16   :  { %575 = shalt.err (!%p572_p9)
}
  0x17   :  { %24 = dma.hbm_to_vmem [thread:$0]  %s705_s0, 192, %s19_s18, [#allocation3], %s646_s20, %s646_s20, %s647_s21  }
  0x18   :  { %s648_s27 = smov [#allocation7]   ;;  %s649_s29 = smov [#allocation8]  }
  0x19   :  { %s42_s28 = sshll.u32 %s648_s27, 4  ;;  %s54_s30 = sshll.u32 %s649_s29, 4  ;;  %s43_s28 = int_to_ptr.vmem [resolvable:$true] %s42_s28  ;;  %s55_s30 = int_to_ptr.vmem [resolvable:$true] %s54_s30 }
  0x1a   :  { %s584_s1 = scalar_lea.vmem %s43_s28, 1024  ;;  %p589_p11 = scmp.lt.s32.totalorder %s43_s28, %s43_s28 }
  0x1b   :  { %p585_p10 = scmp.ne.s32.totalorder %s43_s28, %s584_s1  ;;  %p590_p12 = scmp.lt.s32.totalorder %s584_s1, %s584_s1 }
  0x1d   :  { %p591_p13 = por %p590_p12, %p589_p11 }
  0x1f   :  { %p592_p0 = pnand %p591_p13, %p585_p10 }
  0x21   :  { %595 = shalt.err (!%p592_p0)
}
  0x22   :  { %48 = dma.hbm_to_vmem [thread:$0]  %s707_s2, 1024, %s43_s28, [#allocation6], %s646_s20, %s646_s20, %s647_s21  }
  0x23   :  { %s604_s0 = scalar_lea.vmem %s55_s30, 1024  ;;  %p609_p2 = scmp.lt.s32.totalorder %s55_s30, %s55_s30 }
  0x24   :  { %p605_p1 = scmp.ne.s32.totalorder %s55_s30, %s604_s0  ;;  %p610_p3 = scmp.lt.s32.totalorder %s604_s0, %s604_s0 }
  0x26   :  { %p611_p4 = por %p610_p3, %p609_p2 }
  0x28   :  { %p612_p5 = pnand %p611_p4, %p605_p1 }
  0x2a   :  { %615 = shalt.err (!%p612_p5)
}
  0x2b   :  { %60 = dma.hbm_to_vmem [thread:$0]  %s708_s3, 1024, %s55_s30, [#allocation9], %s646_s20, %s646_s20, %s647_s21  }
  0x2c   :  { %636 = dma.done.wait [#allocation3], 192  }
  0x2d   :  { %637 = vsyncadd [#allocation3], 4294967104 }
  0x2e   :  { %638 = dma.done.wait [#allocation6], 1216  }
  0x2f   :  { %639 = vsyncadd [#allocation6], 4294966080 }
  0x30   :  { %640 = dma.done.wait [#allocation9], 1024  }
  0x31   :  { %641 = vsyncadd [#allocation9], 4294966272  ;;  %v516_v0 = vld [vmem:[#allocation8 + $0x38] sm:$0xff]   ;;  %v518_v2 = vld [vmem:[#allocation8 + $0x30] sm:$0xff]   ;;  %s650_s2 = smov [#allocation10]  }
  0x32   :  { %v517_v1 = vld [vmem:[#allocation7 + $0x38] sm:$0xff]   ;;  %447 = vmatprep.subr.bf16.mxu0 %v516_v0  ;;  %v519_v3 = vld [vmem:[#allocation7 + $0x30] sm:$0xff]   ;;  %v520_v4 = vld [vmem:[#allocation8 + $0x28] sm:$0xff]   ;;  %s383_s3 = sshll.u32 %s650_s2, 4  ;;  %s384_s3 = int_to_ptr.vmem [resolvable:$true] %s383_s3 }
  0x33   :  { %467 = vmatprep.subr.bf16.mxu1 %v517_v1  ;;  %448 = vmatpush3.bf16.msra.mxu0 %v516_v0  ;;  %v521_v5 = vld [vmem:[#allocation7 + $0x28] sm:$0xff]   ;;  %v522_v6 = vld [vmem:[#allocation8 + $0x20] sm:$0xff]   ;;  %v524_v8 = vld [vmem:[#allocation8 + $0x18] sm:$0xff]   ;;  %s616_s9 = scalar_lea.vmem %s384_s3, 384  ;;  %p621_p7 = scmp.lt.s32.totalorder %s384_s3, %s384_s3 }
  0x34   :  { %468 = vmatpush3.bf16.msra.mxu1 %v517_v1  ;;  %449 = vmatprep.subr.bf16.mxu0 %v518_v2  ;;  %v523_v7 = vld [vmem:[#allocation7 + $0x20] sm:$0xff]   ;;  %v525_v9 = vld [vmem:[#allocation7 + $0x18] sm:$0xff]   ;;  %v526_v10 = vld [vmem:[#allocation8 + $0x10] sm:$0xff]   ;;  %p617_p6 = scmp.ne.s32.totalorder %s384_s3, %s616_s9  ;;  %p622_p8 = scmp.lt.s32.totalorder %s616_s9, %s616_s9 }
  0x35   :  { %469 = vmatprep.subr.bf16.mxu1 %v519_v3  ;;  %v532_v11 = vld [vmem:[#allocation2] sm:$0xff]   ;;  %v527_v12 = vld [vmem:[#allocation7 + $0x10] sm:$0xff]   ;;  %v530_v15 = vld [vmem:[#allocation8] sm:$0xff]  }
  0x36   :  { %463 = vmatprep.mubr.bf16.mxu0 %v532_v11  ;;  %483 = vmatprep.mubr.bf16.mxu1 %v532_v11  ;;  %v528_v13 = vld [vmem:[#allocation8 + $0x8] sm:$0xff]   ;;  %v531_v16 = vld [vmem:[#allocation7] sm:$0xff]   ;;  %v533_v17 = vld [vmem:[#allocation2 + $0x8] ss:$0 sps:$4 sm:$0xff]   ;;  %p623_p9 = por %p622_p8, %p621_p7 }
  0x37   :  { %450 = vmatpush3.bf16.msra.mxu0 %v518_v2  ;;  %v529_v14 = vld [vmem:[#allocation7 + $0x8] sm:$0xff]   ;;  %v534_v18 = vld [vmem:[#allocation5] sm:$0xff]   ;;  %v535_v19 = vld [vmem:[#allocation5 + $0x8] ss:$0 sps:$4 sm:$0xff]  }
  0x38   :  { %470 = vmatpush3.bf16.msra.mxu1 %v519_v3  ;;  %451 = vmatprep.subr.bf16.mxu0 %v520_v4  ;;  %p624_p10 = pnand %p623_p9, %p617_p6 }
  0x39   :  { %471 = vmatprep.subr.bf16.mxu1 %v521_v5 }
  0x3b   :  { %452 = vmatpush3.bf16.msra.mxu0 %v520_v4 }
  0x3c   :  { %472 = vmatpush3.bf16.msra.mxu1 %v521_v5  ;;  %453 = vmatprep.subr.bf16.mxu0 %v522_v6 }
  0x3d   :  { %473 = vmatprep.subr.bf16.mxu1 %v523_v7 }
  0x3f   :  { %454 = vmatpush3.bf16.msra.mxu0 %v522_v6 }
  0x40   :  { %474 = vmatpush3.bf16.msra.mxu1 %v523_v7  ;;  %455 = vmatprep.subr.bf16.mxu0 %v524_v8 }
  0x41   :  { %475 = vmatprep.subr.bf16.mxu1 %v525_v9 }
  0x43   :  { %456 = vmatpush3.bf16.msra.mxu0 %v524_v8 }
  0x44   :  { %476 = vmatpush3.bf16.msra.mxu1 %v525_v9  ;;  %457 = vmatprep.subr.bf16.mxu0 %v526_v10 }
  0x45   :  { %477 = vmatprep.subr.bf16.mxu1 %v527_v12 }
  0x47   :  { %458 = vmatpush3.bf16.msra.mxu0 %v526_v10 }
  0x48   :  { %478 = vmatpush3.bf16.msra.mxu1 %v527_v12  ;;  %459 = vmatprep.subr.bf16.mxu0 %v528_v13 }
  0x49   :  { %479 = vmatprep.subr.bf16.mxu1 %v529_v14 }
  0x4b   :  { %460 = vmatpush3.bf16.msra.mxu0 %v528_v13 }
  0x4c   :  { %480 = vmatpush3.bf16.msra.mxu1 %v529_v14  ;;  %461 = vmatprep.subr.bf16.mxu0 %v530_v15 }
  0x4d   :  { %481 = vmatprep.subr.bf16.mxu1 %v531_v16 }
  0x4f   :  { %462 = vmatpush3.bf16.msra.mxu0 %v530_v15 }
  0x50   :  { %482 = vmatpush3.bf16.msra.mxu1 %v531_v16  ;;  %487 = vmatprep.subr.bf16.mxu0 %v517_v1 }
  0x52   :  { %464 = vmatmul.mubr.bf16.vlgmr.msra.gmra.mxu0 %v533_v17 }
  0x53   :  { %484 = vmatmul.mubr.bf16.vlgmr.msra.gmra.mxu1 %v533_v17  ;;  %488 = vmatpush3.bf16.msra.mxu0 %v517_v1 }
  0x54   :  { %489 = vmatprep.subr.bf16.mxu0 %v519_v3  ;;  %503 = vmatprep.mubr.bf16.mxu0 %v534_v18 }
  0x57   :  { %490 = vmatpush3.bf16.msra.mxu0 %v519_v3 }
  0x58   :  { %491 = vmatprep.subr.bf16.mxu0 %v521_v5 }
  0x5b   :  { %492 = vmatpush3.bf16.msra.mxu0 %v521_v5 }
  0x5c   :  { %493 = vmatprep.subr.bf16.mxu0 %v523_v7 }
  0x5f   :  { %494 = vmatpush3.bf16.msra.mxu0 %v523_v7 }
  0x60   :  { %495 = vmatprep.subr.bf16.mxu0 %v525_v9 }
  0x63   :  { %496 = vmatpush3.bf16.msra.mxu0 %v525_v9 }
  0x64   :  { %497 = vmatprep.subr.bf16.mxu0 %v527_v12 }
  0x67   :  { %498 = vmatpush3.bf16.msra.mxu0 %v527_v12 }
  0x68   :  { %499 = vmatprep.subr.bf16.mxu0 %v529_v14 }
  0x6b   :  { %500 = vmatpush3.bf16.msra.mxu0 %v529_v14 }
  0x6c   :  { %501 = vmatprep.subr.bf16.mxu0 %v531_v16 }
  0x6f   :  { %502 = vmatpush3.bf16.msra.mxu0 %v531_v16 }
  0x72   :  { %504 = vmatmul.mubr.bf16.vlgmr.msra.gmra.mxu0 %v535_v19 }
 0x112   :  { %v465_v20 = vpop.f32.mrf.mxu0 }
 0x113   :  { %v485_v21 = vpop.f32.mrf.mxu1 }
 0x114   :  { %v201_v22 = vpop.f32.mrf.mxu0  ;;  %v306_v27 = vadd.f32 %v485_v21, %v465_v20 }
 0x115   :  { %v297_v23 = vpop.f32.mrf.mxu1 }
 0x116   :  { %v466_v24 = vpop.f32.mrf.mxu0  ;;  %v298_v29 = vadd.f32 %v297_v23, %v201_v22 }
 0x117   :  { %v486_v25 = vpop.f32.mrf.mxu1 }
 0x118   :  { %v204_v26 = vpop.f32.mrf.mxu0 }
 0x119   :  { %v300_v31 = vpop.f32.mrf.mxu1 }
 0x11a   :  { %v301_v35 = vadd.f32 %v300_v31, %v204_v26 }
 0x132   :  { %v505_v28 = vpop.f32.mrf.mxu0 }
 0x133   :  { %v374_v30 = vadd.f32 %v505_v28, %v306_v27 }
 0x134   :  { %v358_v32 = vpop.f32.mrf.mxu0 }
 0x135   :  { %377 = vst [vmem:[#allocation10 + $0x10] sm:$0xff] %v374_v30  ;;  %v372_v33 = vadd.f32 %v358_v32, %v298_v29 }
 0x136   :  { %v506_v34 = vpop.f32.mrf.mxu0 }
 0x137   :  { %375 = vst [vmem:[#allocation10] sm:$0xff] %v372_v33 }
 0x138   :  { %v361_v36 = vpop.f32.mrf.mxu0 }
 0x139   :  { %v373_v37 = vadd.f32 %v361_v36, %v301_v35 }
 0x13b   :  { %376 = vst [vmem:[#allocation10 + $0x8] sm:$0xff] %v373_v37 }
 0x13c   :  { %627 = shalt.err (!%p624_p10)
}
 0x13d   :  { %s651_s10 = smov 128   ;;  %s652_s11 = smov 8  }
 0x13e   :  { %389 = dma.vmem_to_hbm [thread:$0]  %s384_s3, 384, %s709_s4, [#allocation4], %s651_s10, %s651_s10, %s652_s11  }
 0x13f   :  { %642 = dma.done.wait [#allocation4], 384  }
 0x140   :  { %643 = vsyncadd [#allocation4], 4294966912 }
 0x141   :  { %393 = vsyncpa [#allocation3], 1 }
 0x142   :  { %394 = vsyncpa [#allocation6], 1 }
 0x143   :  { %395 = vsyncpa [#allocation9], 1 }
 0x144   :  { %396 = vsyncpa [#allocation4], 1 }

</bundles_post_ra>
